<compile_context>
chip_gen: v7x
topology: tpu7x:2x2x1
jax: 0.10.0
libtpu: 0.0.40
codegen_flags: <defaults>
</compile_context>

<pallas_src>
import jax
import jax.numpy as jnp
from jax.experimental import pallas as pl
from jax.experimental.pallas import tpu as pltpu


def _round_up(x, m):
    return (x + m - 1) // m * m


def _make_conv_bn_relu_kernel(wp, nacc, n, cin):
    """Fused StdConv2d(3x3, pad=1) + folded BN + ReLU for one batch element.

    Refs:
      x_ref:     (1, cin, n)      padded-flat input (zeros in spatial halo + lane tail)
      w_ref:     (cout, 9*cin)    raw conv weights, laid out [dy][dx][cin] per row
      scale_ref: (cout, 1)        gamma / sqrt(running_var + eps)
      shift_ref: (cout, 1)        (conv_bias - running_mean) * scale + beta
      mask_ref:  (1, nacc)        1.0 on real spatial columns, 0.0 on halo columns
      o_ref:     (1, cout, n)     output in the same padded-flat layout
    """

    def kernel(x_ref, w_ref, scale_ref, shift_ref, mask_ref, o_ref):
        cout = o_ref.shape[1]

        # ---- StdConv2d weight standardization (per output channel, unbiased=False) ----
        w = w_ref[...]                                   # (cout, 9*cin) f32
        w_mean = jnp.mean(w, axis=1, keepdims=True)
        w_dev = w - w_mean
        w_var = jnp.mean(w_dev * w_dev, axis=1, keepdims=True)
        w_std = w_dev * jax.lax.rsqrt(w_var + 1e-5)      # (cout, 9*cin)

        # ---- 3x3 conv as 9 shifted lane-slices x small matmuls ----
        acc = jnp.zeros((cout, nacc), jnp.float32)
        for dy in range(3):
            for dx in range(3):
                tap = dy * 3 + dx
                off = dy * wp + dx                        # static lane offset
                xs = x_ref[0, :, off:off + nacc]          # (cin, nacc) contiguous lane slice
                wt = w_std[:, tap * cin:(tap + 1) * cin]  # (cout, cin)
                acc = acc + jnp.dot(wt, xs, preferred_element_type=jnp.float32)

        # ---- folded bias + BatchNorm + ReLU, then zero the halo columns ----
        y = jnp.maximum(acc * scale_ref[...] + shift_ref[...], 0.0)
        y = y * mask_ref[...]                             # zero right/left halo columns

        # ---- write back in padded-flat layout (halo rows / lane tail are zero) ----
        o_ref[0] = jnp.zeros((cout, n), dtype=o_ref.dtype)
        o_ref[0, :, wp + 1:wp + 1 + nacc] = y

    return kernel


def double_conv(x, params):
    """x: (B, Cin, H, W) float32 NCHW, params: dict of PyTorch-convention tensors."""
    B, cin, H, W = x.shape
    hp, wp = H + 2, W + 2
    nacc = H * wp                                        # accumulator width (padded-row major)
    n = _round_up(max(hp * wp, 2 * wp + 2 + nacc), 128)  # lane-aligned flat length

    # Padded-flat input for the first conv.
    xp = jnp.pad(x, ((0, 0), (0, 0), (1, 1), (1, 1)))
    xf = xp.reshape(B, cin, hp * wp)
    xf = jnp.pad(xf, ((0, 0), (0, 0), (0, n - hp * wp)))

    # Column mask: 1.0 where the accumulator column is a real spatial column.
    col = jnp.arange(nacc, dtype=jnp.int32) % wp
    mask = (col < W).astype(jnp.float32).reshape(1, nacc)

    def fold_bn(b_conv, gamma, beta, rmean, rvar):
        s = gamma / jnp.sqrt(rvar + 1e-5)
        t = (b_conv - rmean) * s + beta
        c = s.shape[0]
        return s.reshape(c, 1).astype(jnp.float32), t.reshape(c, 1).astype(jnp.float32)

    def run_pass(act_f, w, b_conv, gamma, beta, rmean, rvar):
        cout, cin_l = w.shape[0], w.shape[1]
        # (cout, cin, 3, 3) -> (cout, 3, 3, cin) -> (cout, 9*cin): tap t occupies cols [t*cin, (t+1)*cin)
        w2d = jnp.transpose(w, (0, 2, 3, 1)).reshape(cout, 9 * cin_l).astype(jnp.float32)
        scale, shift = fold_bn(b_conv, gamma, beta, rmean, rvar)

        return pl.pallas_call(
            _make_conv_bn_relu_kernel(wp, nacc, n, cin_l),
            out_shape=jax.ShapeDtypeStruct((B, cout, n), jnp.float32),
            grid_spec=pltpu.PrefetchScalarGridSpec(
                num_scalar_prefetch=0,
                grid=(B,),
                in_specs=[
                    pl.BlockSpec((1, cin_l, n), lambda bi: (bi, 0, 0)),
                    pl.BlockSpec((cout, 9 * cin_l), lambda bi: (0, 0)),
                    pl.BlockSpec((cout, 1), lambda bi: (0, 0)),
                    pl.BlockSpec((cout, 1), lambda bi: (0, 0)),
                    pl.BlockSpec((1, nacc), lambda bi: (0, 0)),
                ],
                out_specs=pl.BlockSpec((1, cout, n), lambda bi: (bi, 0, 0)),
            ),
            compiler_params=pltpu.CompilerParams(
                dimension_semantics=("parallel",)),
        )(act_f, w2d, scale, shift, mask)

    # First conv block; output already in the padded-flat layout the second pass expects.
    y1f = run_pass(xf, params["w1"], params["b1"], params["g1"], params["be1"],
                   params["m1"], params["v1"])
    # Second conv block consumes the first one's output with no intermediate reshuffle.
    y2f = run_pass(y1f, params["w2"], params["b2"], params["g2"], params["be2"],
                   params["m2"], params["v2"])

    cout = params["w2"].shape[0]
    out = y2f[:, :, :hp * wp].reshape(B, cout, hp, wp)[:, :, 1:H + 1, 1:W + 1]
    return out


def double_conv_ref(x, p):
    """Pure-JAX reference matching the PyTorch module (inference-mode BN)."""

    def std_w(w):
        m = jnp.mean(w, axis=(1, 2, 3), keepdims=True)
        v = jnp.mean((w - m) ** 2, axis=(1, 2, 3), keepdims=True)
        return (w - m) / jnp.sqrt(v + 1e-5)

    def block(h, w, b, gamma, beta, rmean, rvar):
        y = jax.lax.conv_general_dilated(
            h, std_w(w), window_strides=(1, 1), padding=((1, 1), (1, 1)),
            dimension_numbers=("NCHW", "OIHW", "NCHW"))
        y = y + b[None, :, None, None]
        y = (y - rmean[None, :, None, None]) / jnp.sqrt(rvar[None, :, None, None] + 1e-5)
        y = gamma[None, :, None, None] * y + beta[None, :, None, None]
        return jnp.maximum(y, 0.0)

    y = block(x, p["w1"], p["b1"], p["g1"], p["be1"], p["m1"], p["v1"])
    return block(y, p["w2"], p["b2"], p["g2"], p["be2"], p["m2"], p["v2"])


if __name__ == "__main__":
    key = jax.random.PRNGKey(0)
    B, Cin, Cout, H, W = 2, 4, 8, 16, 16   # DoubleConv(4, 8): mid_channels = out_channels = 8
    ks = jax.random.split(key, 13)

    x = jax.random.normal(ks[0], (B, Cin, H, W), dtype=jnp.float32)
    params = {
        # PyTorch Conv2d weight convention: (out_channels, in_channels, kH, kW)
        "w1": jax.random.normal(ks[1], (Cout, Cin, 3, 3), dtype=jnp.float32) * 0.2,
        "b1": 0.1 * jax.random.normal(ks[2], (Cout,), dtype=jnp.float32),
        "g1": 1.0 + 0.1 * jax.random.normal(ks[3], (Cout,), dtype=jnp.float32),
        "be1": 0.1 * jax.random.normal(ks[4], (Cout,), dtype=jnp.float32),
        "m1": 0.1 * jax.random.normal(ks[5], (Cout,), dtype=jnp.float32),
        "v1": 0.5 + jax.random.uniform(ks[6], (Cout,), dtype=jnp.float32),
        "w2": jax.random.normal(ks[7], (Cout, Cout, 3, 3), dtype=jnp.float32) * 0.2,
        "b2": 0.1 * jax.random.normal(ks[8], (Cout,), dtype=jnp.float32),
        "g2": 1.0 + 0.1 * jax.random.normal(ks[9], (Cout,), dtype=jnp.float32),
        "be2": 0.1 * jax.random.normal(ks[10], (Cout,), dtype=jnp.float32),
        "m2": 0.1 * jax.random.normal(ks[11], (Cout,), dtype=jnp.float32),
        "v2": 0.5 + jax.random.uniform(ks[12], (Cout,), dtype=jnp.float32),
    }

    y = double_conv(x, params)
    y = jax.block_until_ready(y)

    y_ref = double_conv_ref(x, params)
    assert y.shape == (B, Cout, H, W), f"bad output shape {y.shape}"
    max_err = float(jnp.max(jnp.abs(y - y_ref)))
    assert jnp.allclose(y, y_ref, atol=2e-2, rtol=2e-2), f"mismatch vs reference, max_err={max_err}"

    print("KERNEL_OK")
</pallas_src>

<mosaic_0001>
module attributes {stable_mosaic.version = 11 : i64} {
  func.func @kernel(%arg0: i32, %arg1: memref<1x4x384xf32, #tpu.memory_space<vmem>>, %arg2: memref<8x36xf32, #tpu.memory_space<vmem>>, %arg3: memref<8x1xf32, #tpu.memory_space<vmem>>, %arg4: memref<8x1xf32, #tpu.memory_space<vmem>>, %arg5: memref<1x288xf32, #tpu.memory_space<vmem>>, %arg6: memref<1x8x384xf32, #tpu.memory_space<vmem>>) attributes {dimension_semantics = [#tpu.dimension_semantics<parallel>], iteration_bounds = array<i64: 2>, scalar_prefetch = 0 : i64, scratch_operands = 0 : i64, tpu.core_type = #tpu.core_type<tc>, window_params = [{transform_indices = @transform_0, window_bounds = array<i64: 1, 4, 384>}, {pipeline_mode = #tpu.pipeline_mode<synchronous>, transform_indices = @transform_1, window_bounds = array<i64: 8, 36>}, {pipeline_mode = #tpu.pipeline_mode<synchronous>, transform_indices = @transform_2, window_bounds = array<i64: 8, 1>}, {pipeline_mode = #tpu.pipeline_mode<synchronous>, transform_indices = @transform_3, window_bounds = array<i64: 8, 1>}, {pipeline_mode = #tpu.pipeline_mode<synchronous>, transform_indices = @transform_4, window_bounds = array<i64: 1, 288>}, {transform_indices = @transform_5, window_bounds = array<i64: 1, 8, 384>}]} {
    %c0 = arith.constant 0 : index
    %c0_0 = arith.constant 0 : index
    %0 = vector.load %arg2[%c0, %c0_0] : memref<8x36xf32, #tpu.memory_space<vmem>>, vector<8x36xf32>
    %cst = arith.constant dense<0.000000e+00> : vector<8xf32>
    %1 = vector.multi_reduction <add>, %0, %cst [1] : vector<8x36xf32> to vector<8xf32>
    %2 = vector.shape_cast %1 : vector<8xf32> to vector<8x1xf32>
    %cst_1 = arith.constant 3.600000e+01 : f32
    %3 = vector.broadcast %cst_1 : f32 to vector<8x1xf32>
    %4 = arith.divf %2, %3 : vector<8x1xf32>
    %5 = vector.broadcast %4 : vector<8x1xf32> to vector<8x36xf32>
    %6 = arith.subf %0, %5 : vector<8x36xf32>
    %7 = arith.mulf %6, %6 : vector<8x36xf32>
    %cst_2 = arith.constant dense<0.000000e+00> : vector<8xf32>
    %8 = vector.multi_reduction <add>, %7, %cst_2 [1] : vector<8x36xf32> to vector<8xf32>
    %9 = vector.shape_cast %8 : vector<8xf32> to vector<8x1xf32>
    %cst_3 = arith.constant 3.600000e+01 : f32
    %10 = vector.broadcast %cst_3 : f32 to vector<8x1xf32>
    %11 = arith.divf %9, %10 : vector<8x1xf32>
    %cst_4 = arith.constant 9.99999974E-6 : f32
    %12 = vector.broadcast %cst_4 : f32 to vector<8x1xf32>
    %13 = arith.addf %11, %12 : vector<8x1xf32>
    %14 = math.rsqrt %13 : vector<8x1xf32>
    %15 = vector.broadcast %14 : vector<8x1xf32> to vector<8x36xf32>
    %16 = arith.mulf %6, %15 : vector<8x36xf32>
    %cst_5 = arith.constant 0.000000e+00 : f32
    %17 = vector.broadcast %cst_5 : f32 to vector<8x288xf32>
    %c0_6 = arith.constant 0 : index
    %c0_7 = arith.constant 0 : index
    %c0_8 = arith.constant 0 : index
    %18 = vector.load %arg1[%c0_6, %c0_7, %c0_8] : memref<1x4x384xf32, #tpu.memory_space<vmem>>, vector<1x4x288xf32>
    %19 = vector.shape_cast %18 : vector<1x4x288xf32> to vector<4x288xf32>
    %20 = vector.extract_strided_slice %16 {offsets = [0, 0], sizes = [8, 4], strides = [1, 1]} : vector<8x36xf32> to vector<8x4xf32>
    %cst_9 = arith.constant dense<0.000000e+00> : vector<8x288xf32>
    %21 = tpu.matmul %20, %19, %cst_9 {dimension_numbers = #tpu.dot_dimension_numbers<[1], [0], [0], [1], [0, 0, 1, 1], [], []>} : vector<8x4xf32>, vector<4x288xf32>, vector<8x288xf32> -> vector<8x288xf32>
    %22 = arith.addf %17, %21 : vector<8x288xf32>
    %c0_10 = arith.constant 0 : index
    %c0_11 = arith.constant 0 : index
    %c1 = arith.constant 1 : index
    %23 = vector.load %arg1[%c0_10, %c0_11, %c1] : memref<1x4x384xf32, #tpu.memory_space<vmem>>, vector<1x4x288xf32>
    %24 = vector.shape_cast %23 : vector<1x4x288xf32> to vector<4x288xf32>
    %25 = vector.extract_strided_slice %16 {offsets = [0, 4], sizes = [8, 4], strides = [1, 1]} : vector<8x36xf32> to vector<8x4xf32>
    %cst_12 = arith.constant dense<0.000000e+00> : vector<8x288xf32>
    %26 = tpu.matmul %25, %24, %cst_12 {dimension_numbers = #tpu.dot_dimension_numbers<[1], [0], [0], [1], [0, 0, 1, 1], [], []>} : vector<8x4xf32>, vector<4x288xf32>, vector<8x288xf32> -> vector<8x288xf32>
    %27 = arith.addf %22, %26 : vector<8x288xf32>
    %c0_13 = arith.constant 0 : index
    %c0_14 = arith.constant 0 : index
    %c2 = arith.constant 2 : index
    %28 = vector.load %arg1[%c0_13, %c0_14, %c2] : memref<1x4x384xf32, #tpu.memory_space<vmem>>, vector<1x4x288xf32>
    %29 = vector.shape_cast %28 : vector<1x4x288xf32> to vector<4x288xf32>
    %30 = vector.extract_strided_slice %16 {offsets = [0, 8], sizes = [8, 4], strides = [1, 1]} : vector<8x36xf32> to vector<8x4xf32>
    %cst_15 = arith.constant dense<0.000000e+00> : vector<8x288xf32>
    %31 = tpu.matmul %30, %29, %cst_15 {dimension_numbers = #tpu.dot_dimension_numbers<[1], [0], [0], [1], [0, 0, 1, 1], [], []>} : vector<8x4xf32>, vector<4x288xf32>, vector<8x288xf32> -> vector<8x288xf32>
    %32 = arith.addf %27, %31 : vector<8x288xf32>
    %c0_16 = arith.constant 0 : index
    %c0_17 = arith.constant 0 : index
    %c18 = arith.constant 18 : index
    %33 = vector.load %arg1[%c0_16, %c0_17, %c18] : memref<1x4x384xf32, #tpu.memory_space<vmem>>, vector<1x4x288xf32>
    %34 = vector.shape_cast %33 : vector<1x4x288xf32> to vector<4x288xf32>
    %35 = vector.extract_strided_slice %16 {offsets = [0, 12], sizes = [8, 4], strides = [1, 1]} : vector<8x36xf32> to vector<8x4xf32>
    %cst_18 = arith.constant dense<0.000000e+00> : vector<8x288xf32>
    %36 = tpu.matmul %35, %34, %cst_18 {dimension_numbers = #tpu.dot_dimension_numbers<[1], [0], [0], [1], [0, 0, 1, 1], [], []>} : vector<8x4xf32>, vector<4x288xf32>, vector<8x288xf32> -> vector<8x288xf32>
    %37 = arith.addf %32, %36 : vector<8x288xf32>
    %c0_19 = arith.constant 0 : index
    %c0_20 = arith.constant 0 : index
    %c19 = arith.constant 19 : index
    %38 = vector.load %arg1[%c0_19, %c0_20, %c19] : memref<1x4x384xf32, #tpu.memory_space<vmem>>, vector<1x4x288xf32>
    %39 = vector.shape_cast %38 : vector<1x4x288xf32> to vector<4x288xf32>
    %40 = vector.extract_strided_slice %16 {offsets = [0, 16], sizes = [8, 4], strides = [1, 1]} : vector<8x36xf32> to vector<8x4xf32>
    %cst_21 = arith.constant dense<0.000000e+00> : vector<8x288xf32>
    %41 = tpu.matmul %40, %39, %cst_21 {dimension_numbers = #tpu.dot_dimension_numbers<[1], [0], [0], [1], [0, 0, 1, 1], [], []>} : vector<8x4xf32>, vector<4x288xf32>, vector<8x288xf32> -> vector<8x288xf32>
    %42 = arith.addf %37, %41 : vector<8x288xf32>
    %c0_22 = arith.constant 0 : index
    %c0_23 = arith.constant 0 : index
    %c20 = arith.constant 20 : index
    %43 = vector.load %arg1[%c0_22, %c0_23, %c20] : memref<1x4x384xf32, #tpu.memory_space<vmem>>, vector<1x4x288xf32>
    %44 = vector.shape_cast %43 : vector<1x4x288xf32> to vector<4x288xf32>
    %45 = vector.extract_strided_slice %16 {offsets = [0, 20], sizes = [8, 4], strides = [1, 1]} : vector<8x36xf32> to vector<8x4xf32>
    %cst_24 = arith.constant dense<0.000000e+00> : vector<8x288xf32>
    %46 = tpu.matmul %45, %44, %cst_24 {dimension_numbers = #tpu.dot_dimension_numbers<[1], [0], [0], [1], [0, 0, 1, 1], [], []>} : vector<8x4xf32>, vector<4x288xf32>, vector<8x288xf32> -> vector<8x288xf32>
    %47 = arith.addf %42, %46 : vector<8x288xf32>
    %c0_25 = arith.constant 0 : index
    %c0_26 = arith.constant 0 : index
    %c36 = arith.constant 36 : index
    %48 = vector.load %arg1[%c0_25, %c0_26, %c36] : memref<1x4x384xf32, #tpu.memory_space<vmem>>, vector<1x4x288xf32>
    %49 = vector.shape_cast %48 : vector<1x4x288xf32> to vector<4x288xf32>
    %50 = vector.extract_strided_slice %16 {offsets = [0, 24], sizes = [8, 4], strides = [1, 1]} : vector<8x36xf32> to vector<8x4xf32>
    %cst_27 = arith.constant dense<0.000000e+00> : vector<8x288xf32>
    %51 = tpu.matmul %50, %49, %cst_27 {dimension_numbers = #tpu.dot_dimension_numbers<[1], [0], [0], [1], [0, 0, 1, 1], [], []>} : vector<8x4xf32>, vector<4x288xf32>, vector<8x288xf32> -> vector<8x288xf32>
    %52 = arith.addf %47, %51 : vector<8x288xf32>
    %c0_28 = arith.constant 0 : index
    %c0_29 = arith.constant 0 : index
    %c37 = arith.constant 37 : index
    %53 = vector.load %arg1[%c0_28, %c0_29, %c37] : memref<1x4x384xf32, #tpu.memory_space<vmem>>, vector<1x4x288xf32>
    %54 = vector.shape_cast %53 : vector<1x4x288xf32> to vector<4x288xf32>
    %55 = vector.extract_strided_slice %16 {offsets = [0, 28], sizes = [8, 4], strides = [1, 1]} : vector<8x36xf32> to vector<8x4xf32>
    %cst_30 = arith.constant dense<0.000000e+00> : vector<8x288xf32>
    %56 = tpu.matmul %55, %54, %cst_30 {dimension_numbers = #tpu.dot_dimension_numbers<[1], [0], [0], [1], [0, 0, 1, 1], [], []>} : vector<8x4xf32>, vector<4x288xf32>, vector<8x288xf32> -> vector<8x288xf32>
    %57 = arith.addf %52, %56 : vector<8x288xf32>
    %c0_31 = arith.constant 0 : index
    %c0_32 = arith.constant 0 : index
    %c38 = arith.constant 38 : index
    %58 = vector.load %arg1[%c0_31, %c0_32, %c38] : memref<1x4x384xf32, #tpu.memory_space<vmem>>, vector<1x4x288xf32>
    %59 = vector.shape_cast %58 : vector<1x4x288xf32> to vector<4x288xf32>
    %60 = vector.extract_strided_slice %16 {offsets = [0, 32], sizes = [8, 4], strides = [1, 1]} : vector<8x36xf32> to vector<8x4xf32>
    %cst_33 = arith.constant dense<0.000000e+00> : vector<8x288xf32>
    %61 = tpu.matmul %60, %59, %cst_33 {dimension_numbers = #tpu.dot_dimension_numbers<[1], [0], [0], [1], [0, 0, 1, 1], [], []>} : vector<8x4xf32>, vector<4x288xf32>, vector<8x288xf32> -> vector<8x288xf32>
    %62 = arith.addf %57, %61 : vector<8x288xf32>
    %c0_34 = arith.constant 0 : index
    %c0_35 = arith.constant 0 : index
    %63 = vector.load %arg3[%c0_34, %c0_35] : memref<8x1xf32, #tpu.memory_space<vmem>>, vector<8x1xf32>
    %64 = vector.broadcast %63 : vector<8x1xf32> to vector<8x288xf32>
    %65 = arith.mulf %62, %64 : vector<8x288xf32>
    %c0_36 = arith.constant 0 : index
    %c0_37 = arith.constant 0 : index
    %66 = vector.load %arg4[%c0_36, %c0_37] : memref<8x1xf32, #tpu.memory_space<vmem>>, vector<8x1xf32>
    %67 = vector.broadcast %66 : vector<8x1xf32> to vector<8x288xf32>
    %68 = arith.addf %65, %67 : vector<8x288xf32>
    %cst_38 = arith.constant 0.000000e+00 : f32
    %69 = vector.broadcast %cst_38 : f32 to vector<8x288xf32>
    %70 = arith.maximumf %68, %69 : vector<8x288xf32>
    %c0_39 = arith.constant 0 : index
    %c0_40 = arith.constant 0 : index
    %71 = vector.load %arg5[%c0_39, %c0_40] : memref<1x288xf32, #tpu.memory_space<vmem>>, vector<1x288xf32>
    %72 = vector.broadcast %71 : vector<1x288xf32> to vector<8x288xf32>
    %73 = arith.mulf %70, %72 : vector<8x288xf32>
    %cst_41 = arith.constant 0.000000e+00 : f32
    %74 = vector.broadcast %cst_41 : f32 to vector<8x384xf32>
    %c0_42 = arith.constant 0 : index
    %c0_43 = arith.constant 0 : index
    %c0_44 = arith.constant 0 : index
    %75 = vector.load %arg6[%c0_42, %c0_43, %c0_44] : memref<1x8x384xf32, #tpu.memory_space<vmem>>, vector<1x8x384xf32>
    %76 = vector.shape_cast %75 : vector<1x8x384xf32> to vector<8x384xf32>
    %77 = vector.shape_cast %74 : vector<8x384xf32> to vector<1x8x384xf32>
    tpu.vector_store %arg6[%c0_42, %c0_43, %c0_44], %77 {strides = array<i32>} : memref<1x8x384xf32, #tpu.memory_space<vmem>>, vector<1x8x384xf32>,
    %c0_45 = arith.constant 0 : index
    %c0_46 = arith.constant 0 : index
    %c19_47 = arith.constant 19 : index
    %78 = vector.load %arg6[%c0_45, %c0_46, %c19_47] : memref<1x8x384xf32, #tpu.memory_space<vmem>>, vector<1x8x288xf32>
    %79 = vector.shape_cast %78 : vector<1x8x288xf32> to vector<8x288xf32>
    %80 = vector.shape_cast %73 : vector<8x288xf32> to vector<1x8x288xf32>
    tpu.vector_store %arg6[%c0_45, %c0_46, %c19_47], %80 {strides = array<i32>} : memref<1x8x384xf32, #tpu.memory_space<vmem>>, vector<1x8x288xf32>,
    return
  }
  func.func @transform_0(%arg0: i32) -> (i32, i32, i32) {
    %c0_i32 = arith.constant 0 : i32
    %c0_i32_0 = arith.constant 0 : i32
    %c0_i32_1 = arith.constant 0 : i32
    return %arg0, %c0_i32, %c0_i32_0 : i32, i32, i32
  }
  func.func @transform_1(%arg0: i32) -> (i32, i32) {
    %c0_i32 = arith.constant 0 : i32
    %c0_i32_0 = arith.constant 0 : i32
    %c0_i32_1 = arith.constant 0 : i32
    return %c0_i32, %c0_i32_0 : i32, i32
  }
  func.func @transform_2(%arg0: i32) -> (i32, i32) {
    %c0_i32 = arith.constant 0 : i32
    %c0_i32_0 = arith.constant 0 : i32
    %c0_i32_1 = arith.constant 0 : i32
    return %c0_i32, %c0_i32_0 : i32, i32
  }
  func.func @transform_3(%arg0: i32) -> (i32, i32) {
    %c0_i32 = arith.constant 0 : i32
    %c0_i32_0 = arith.constant 0 : i32
    %c0_i32_1 = arith.constant 0 : i32
    return %c0_i32, %c0_i32_0 : i32, i32
  }
  func.func @transform_4(%arg0: i32) -> (i32, i32) {
    %c0_i32 = arith.constant 0 : i32
    %c0_i32_0 = arith.constant 0 : i32
    %c0_i32_1 = arith.constant 0 : i32
    return %c0_i32, %c0_i32_0 : i32, i32
  }
  func.func @transform_5(%arg0: i32) -> (i32, i32, i32) {
    %c0_i32 = arith.constant 0 : i32
    %c0_i32_0 = arith.constant 0 : i32
    %c0_i32_1 = arith.constant 0 : i32
    return %arg0, %c0_i32, %c0_i32_0 : i32, i32, i32
  }
}

</mosaic_0001>

<bundles_post_ra>
// kernel: tpu_custom_call.1
= control target key start
LH: loop header
LB: loop body
LE: loop exit
PB: predicated region body
PF: predicated region fallthrough
CT: control target
= control target key end

     0   :  { %10 = vsyncpa [#allocation3], 0  ;;  %s2584_s0 = inlined_call_operand.hbm [shape: f32[2,4,384], index: 0, kind: input, shape index: {}]   ;;  %s2585_s1 = inlined_call_operand.vmem [shape: f32[8,36], index: 1, kind: input, shape index: {}]   ;;  %s2586_s2 = inlined_call_operand.vmem [shape: f32[8,1], index: 2, kind: input, shape index: {}]   ;;  %s2587_s3 = inlined_call_operand.vmem [shape: f32[8,1], index: 3, kind: input, shape index: {}]   ;;  %s2588_s4 = inlined_call_operand.vmem [shape: f32[1,288], index: 4, kind: input, shape index: {}]   ;;  %s2589_s5 = inlined_call_operand.hbm [shape: f32[2,8,384], index: 5, kind: output, shape index: {}]  }
   0x1   :  { %12 = vsyncpa [#allocation3 + $0x1], 0 }
   0x2   :  { %13 = vsyncpa [#allocation4], 0 }
   0x3   :  { %15 = vsyncpa [#allocation4 + $0x1], 0  ;;  %s2271_s18 = smov 0   ;;  %s2273_s19 = smov 0  }
   0x4   :  { %s2275_s20 = smov 0   ;;  %s2277_s21 = smov 0  }
   0x5 LB: > { %s2292_s22 = sadd.s32 4294967295, %s2218_s21   ;;  %s1899_s23 = sadd.s32 4294967294, %s2218_s21   ;;  %s2218_s21 = sphi %s2277_s21, %s2603_s21   ;;  %s2214_s20 = sphi %s2275_s20, %s2602_s20   ;;  %s2210_s19 = sphi %s2273_s19, %s2601_s19   ;;  %s2206_s18 = sphi %s2271_s18, %s2600_s18  }
   0x6   : > { %s2296_s24 = sadd.s32 1, %s2218_s21   ;;  %s28_s25 = sadd.s32 1, %s2214_s20 }
   0x7   : > { %s25_s26 = ssub.s32 %s2218_s21, %s2296_s24  ;;  %p35_p0 = scmp.ne.s32.totalorder %s2214_s20, %s2210_s19 }
   0x8   : > { %p26_p1 = scmp.eq.s32.totalorder %s25_s26, 0  ;;  %p36_p2 = scmp.eq.s32.totalorder %s2218_s21, 0 }
   0x9   : > { %p41_p3 = scmp.ne.s32.totalorder %s2210_s19, %s2206_s18  ;;  %p42_p4 = scmp.eq.s32.totalorder %s2292_s22, 0 }
   0xa   : > { %s2308_s27 = scalar_select %p26_p1, %s2214_s20, %s28_s25  }
   0xb   : > { %p37_p5 = por %p36_p2, %p35_p0  ;;  %p2310_p6 = por %p42_p4, %p41_p3 }
   0xc   : > { %p149_p7 = scmp.eq.s32.totalorder %s2292_s22, 1  ;;  %p155_p8 = scmp.eq.s32.totalorder %s1899_s23, 1 }
   0xd   : > { %p2064_p10 = scmp.lt.s32.totalorder %s2218_s21, 2  ;;  %s187_s6 = sand.u32 1, %s2214_s20  }
   0xe   : > { %p2317_p11 = por %p149_p7, %p35_p0  ;;  %p2321_p12 = por %p155_p8, %p41_p3 }
   0xf   : > { %s2048_s7 = smul.u32 192, %s2218_s21  ;;  %p2332_p13 = pnand %p2064_p10, %p37_p5 }
  0x10   : > { %s2592_s29 = scalar_select %p2317_p11, 1, 0 }
  0x11   : > { %s2593_s30 = scalar_select %p2321_p12, 1, 0 }
  0x12   : > { %s2047_s8 = smul.u32 12, %s187_s6  ;;  %s2330_s11 = scalar_lea.hbm %s2584_s0, %s2048_s7 }
  0x13   : > { %s188_s15 = scalar_lea.sflag [#allocation3], %s187_s6  ;;  %s2122_s16 = scalar_lea.hbm %s2330_s11, 192 }
  0x14   : > { %s191_s13 = scalar_lea.vmem [#allocation2], %s2047_s8  ;;  %p2123_p2 = scmp.ne.s32.totalorder %s2330_s11, %s2122_s16 }
  0x15   : > { %s199_s14 = sshll.u32 %s191_s13, 4  ;;  %p2124_p3 = pneg %p2332_p13  ;;  %s2337_s14 = int_to_ptr.vmem [resolvable:$true] %s199_s14 }
  0x16   : > { %s2127_s25 = scalar_lea.hbm %s2584_s0, 384  ;;  %p2128_p7 = scmp.lt.u32.totalorder %s2330_s11, %s2584_s0 }
  0x17   : > { %p2125_p4 = pnand %p2124_p3, %p2123_p2  ;;  %p2129_p8 = scmp.lt.u32.totalorder %s2127_s25, %s2122_s16 }
  0x18   : > { %p2131_p9 = scmp.lt.u32.totalorder %s2122_s16, %s2330_s11 }
  0x19   : > { %p2126_p5 = pneg %p2125_p4  ;;  %p2130_p10 = por %p2129_p8, %p2128_p7 }
  0x1b   : > { %p2132_p0 = por %p2131_p9, %p2130_p10 }
  0x1d   : > { %p2133_p1 = pnand %p2132_p0, %p2126_p5 }
  0x1f   : > { %2136 = shalt.err (!%p2133_p1)
}
  0x20   : > { %s2137_s6 = scalar_lea.vmem %s2337_s14, 192  ;;  %s2220_s8 = smov [#allocation2]  }
  0x21   : > { %p2138_p2 = scmp.ne.s32.totalorder %s2337_s14, %s2137_s6  ;;  %s2142_s9 = sshll.u32 %s2220_s8, 4  ;;  %s2143_s9 = int_to_ptr.vmem [resolvable:$false] %s2142_s9 }
  0x22   : > { %s2144_s10 = scalar_lea.vmem %s2143_s9, 384  ;;  %p2145_p11 = scmp.lt.s32.totalorder %s2337_s14, %s2143_s9 }
  0x23   : > { %p2140_p4 = pnand %p2138_p2, %p2124_p3  ;;  %p2146_p7 = scmp.lt.s32.totalorder %s2144_s10, %s2137_s6 }
  0x25   : > { %p2141_p12 = pneg %p2140_p4  ;;  %p2147_p8 = por %p2146_p7, %p2145_p11 }
  0x27   : > { %p2148_p9 = pnand %p2147_p8, %p2141_p12 }
  0x29   : > { %2151 = shalt.err (!%p2148_p9)
}
  0x2a   : > { %2059 = dma.hbm_to_vmem [thread:$0]  (!%p2332_p13), %s2330_s11, 192, %s2337_s14, %s188_s15  }
  0x2b   : > { %p2595_p0 = scmp.lt.s32.totalorder %s2218_s21, 3  ;;  %p2596_p1 = scmp.ge.s32.totalorder %s2218_s21, 1 }
  0x2d   : > { %p205_p3 = pnand %p2596_p1, %p2595_p0 }
  0x2e   : > { %s2370_s13 = sand.u32 (!%p205_p3), 1, %s2210_s19  }
  0x2f   : > { %208 = sbr.rel (%p205_p3) target bundleno = 900 (0x384), region = 40  ;;  %s211_s17 = scalar_lea.sflag (!%p205_p3), [#allocation3], %s2370_s13 }
  0x30   : > { %s2049_s16 = smul.u32 (!%p205_p3), 12, %s2370_s13 }
  0x32   : > { %s2374_s23 = scalar_lea.vmem (!%p205_p3), [#allocation2], %s2049_s16 }
  0x36   : > { %2197 = dma.done.wait (%p2310_p6), %s211_s17, 192  }
  0x37   : > { %2199 = vsyncadd (%p2310_p6), %s211_s17, 4294967104  ;;  %vm242_vm0 = vcmask 293888   ;;  %v241_v0 = vld [vmem:[%s2585_s1] sm:$0xff]  ;;  %s2221_s28 = smov 127   ;;  %v2392_v9 = vld [vmem:[%s2374_s23 + $0x8] sm:$0xf] }
  0x38   : > { %v243_v1 = vsel %vm242_vm0, %v241_v0, 0.0  ;;  %v2384_v7 = vld [vmem:[%s2374_s23] sm:$0xff]  ;;  %v743_v10 = vld [vmem:[%s2374_s23 + $0x8] sm:$0xf]  ;;  %s2222_s14 = smov 110   ;;  %v2223_v11 = vmov 0.0  }
  0x39   : > { %244 = vadd.xlane.f32.xlu0 %v243_v1  ;;  %v2388_v8 = vcombine.high %v2384_v7, %v2384_v7  ;;  %1970 = vmatprep.subr.mxu1 %v2223_v11  ;;  %vm2224_vm1 = vmmov 0   ;;  %vm271_vm2 = vcmask 1039360   ;;  %vm277_vm3 = vcmask 1043456   ;;  %s2225_s15 = smov 116   ;;  %s2226_s25 = smov 124   ;;  %v1759_v28 = vld [vmem:[%s2587_s3] sm:$0xff] }
  0x3a   : > { %348 = vmatprep.mubr.f32.mxu0 %v2223_v11  ;;  %1972 = vmatprep.mubr.msk.f32.mxu1 %vm2224_vm1, %v2223_v11  ;;  %v911_v22 = vld [vmem:[%s2374_s23 + $0x8] sm:$0xf]  ;;  %s2227_s26 = smov 109   ;;  %s2228_s7 = smov 126   ;;  %v2238_v29 = vmov 0   ;;  %v1750_v30 = vld [vmem:[%s2586_s2] sm:$0xff] }
  0x3b   : > { %267 = vrot.lane.b32.xlu1 %v2388_v8, %s2221_s28  ;;  %v575_v23 = vld [vmem:[%s2374_s23 + $0x8] sm:$0xf]  ;;  %s2229_s6 = smov 112   ;;  %s2230_s8 = smov 108   ;;  %2118 = vset.pattern.permute.xlu0 %v2238_v29  ;;  %vm274_vm4 = vcmask 31744   ;;  %vm587_vm5 = vcmask 1031168  }
  0x3c   : > { %v1079_v24 = vld [vmem:[%s2374_s23 + $0x8] sm:$0xf]  ;;  %s2231_s9 = smov 120   ;;  %s2232_s10 = smov 92   ;;  %2117 = vset.pattern.permute.xlu1 %v2238_v29  ;;  %vm755_vm6 = vcmask 900096   ;;  %vm923_vm7 = vcmask 891904  }
  0x3d   : > { %v1247_v25 = vld [vmem:[%s2374_s23 + $0x8] sm:$0xf]  ;;  %s2233_s16 = smov 104   ;;  %s2234_s17 = smov 91   ;;  %vm1091_vm8 = vcmask 883712   ;;  %vm1259_vm9 = vcmask 752640  }
  0x3e   : > { %v1415_v26 = vld [vmem:[%s2374_s23 + $0x8] sm:$0xf]  ;;  %s2235_s11 = smov 100   ;;  %s2236_s12 = smov 90   ;;  %vm1427_vm10 = vcmask 744448   ;;  %vm1595_vm11 = vcmask 736256  }
  0x3f   : > { %269 = vrot.lane.b32.xlu1 %v2392_v9, %s2221_s28  ;;  %v1583_v27 = vld [vmem:[%s2374_s23 + $0x8] sm:$0xf]  ;;  %vm1809_vm12 = vcmask 1047704   ;;  %vm1803_vm13 = vcmask 154624   ;;  %vm1812_vm14 = vcmask 416768   ;;  %p2597_p11 = scmp.ne.s32.totalorder %s2592_s29, 0 }
  0xad   : > { %v268_v12 = vpop.permute.xlu1 %267 }
  0xb1   : > { %v270_v13 = vpop.permute.xlu1 %269 }
  0xb2   : > { %v273_v14 = vsel %vm271_vm2, %v268_v12, %v270_v13  ;;  %1971 = vmatpush3.msk.msra.mxu1 %vm277_vm3, %v270_v13 }
  0xb3   : > { %1904 = vmatprep.subr.msk.mxu0 %vm277_vm3, %v273_v14  ;;  %1975 = vmatprep.subr.mxu1 %v2223_v11 }
  0xc6   : > { %v245_v2 = vpop.xlane.xlu0 %244 }
  0xc7   : > { %v247_v3 = vmul.f32 0.027777778, %v245_v2 }
  0xc9   : > { %v248_v4 = vsub.f32 %v241_v0, %v247_v3 }
  0xcb   : > { %v249_v5 = vmul.f32 %v248_v4, %v248_v4 }
  0xcd   : > { %v250_v6 = vsel %vm242_vm0, %v249_v5, 0.0 }
  0xce   : > { %251 = vadd.xlane.f32.xlu0 %v250_v6 }
  0xe4   : > { %265 = vrot.lane.b32.xlu0 %v2384_v7, %s2221_s28  ;;  %s2237_s28 = smov 96  }
  0xe8   : > { %753 = vrot.lane.b32.xlu0 %v743_v10, %s2222_s14  ;;  %v1773_v10 = vlaneseq }
 0x15b   : > { %v252_v15 = vpop.xlane.xlu0 %251 }
 0x15c   : > { %v253_v16 = vmul.f32 0.027777778, %v252_v15 }
 0x15e   : > { %v254_v17 = vadd.f32 1e-05, %v253_v16 }
 0x15f   : > { %v266_v18 = vpop.permute.xlu0 %265 }
 0x160   : > { %2120 = vrsqrt.f32 %v254_v17  ;;  %v272_v19 = vsel %vm271_vm2, %v266_v18, %v268_v12  ;;  %v1774_v12 = vshrl.u32 %v1773_v10, 7  ;;  %v1771_v17 = vld [vmem:[%s2588_s4] sm:$0x7] }
 0x161   : > { %1905 = vmatpush1.msk.msra.mxu0 %vm277_vm3, %v272_v19 }
 0x162   : > { %1909 = vmatprep.subr.msk.mxu0 %vm277_vm3, %v2388_v8  ;;  %v1783_v14 = vsub.s32 2, %v1774_v12  ;;  %v1779_v29 = vsub.s32 1, %v1774_v12 }
 0x163   : > { %v754_v31 = vpop.permute.xlu0 %753 }
 0x16a   : > { %v2121_v20 = vpop.eup %2120 }
 0x16b   : > { %v2408_v21 = vmul.f32 %v2121_v20, %v248_v4  ;;  %v1775_v20 = vsub.s32 0, %v1774_v12 }
 0x16d   : > { %744 = vrot.lane.b32.xlu0 %v2408_v21, %s2225_s15  ;;  %260 = vrot.lane.b32.xlu1 %v2408_v21, %s2226_s25 }
 0x171   : > { %921 = vrot.lane.b32.xlu0 %v911_v22, %s2227_s26  ;;  %583 = vrot.lane.b32.xlu1 %v2388_v8, %s2228_s7 }
 0x175   : > { %912 = vrot.lane.b32.xlu0 %v2408_v21, %s2229_s6  ;;  %585 = vrot.lane.b32.xlu1 %v575_v23, %s2228_s7 }
 0x179   : > { %1089 = vrot.lane.b32.xlu0 %v1079_v24, %s2230_s8  ;;  %581 = vrot.lane.b32.xlu1 %v2384_v7, %s2228_s7 }
 0x17d   : > { %1080 = vrot.lane.b32.xlu0 %v2408_v21, %s2230_s8  ;;  %576 = vrot.lane.b32.xlu1 %v2408_v21, %s2231_s9  ;;  %s2239_s9 = smov 19  }
 0x181   : > { %1257 = vrot.lane.b32.xlu0 %v1247_v25, %s2232_s10  ;;  %751 = vrot.lane.b32.xlu1 %v2388_v8, %s2222_s14  ;;  %v1784_v25 = vrot.slane %v1771_v17, %v1783_v14 }
 0x185   : > { %1248 = vrot.lane.b32.xlu0 %v2408_v21, %s2233_s16  ;;  %749 = vrot.lane.b32.xlu1 %v2384_v7, %s2222_s14  ;;  %s2240_s14 = smov [#allocation5]  }
 0x186   : > { %s2156_s15 = sshll.u32 %s2240_s14, 4  ;;  %s2157_s15 = int_to_ptr.vmem [resolvable:$false] %s2156_s15 }
 0x187   : > { %s2158_s23 = scalar_lea.vmem %s2157_s15, 768 }
 0x189   : > { %1425 = vrot.lane.b32.xlu0 %v1415_v26, %s2234_s17  ;;  %919 = vrot.lane.b32.xlu1 %v2388_v8, %s2227_s26 }
 0x18d   : > { %1416 = vrot.lane.b32.xlu0 %v2408_v21, %s2235_s11  ;;  %917 = vrot.lane.b32.xlu1 %v2384_v7, %s2227_s26  ;;  %s2050_s26 = smul.u32 24, %s2370_s13 }
 0x18f   : > { %s2523_s7 = scalar_lea.vmem [#allocation5], %s2050_s26 }
 0x190   : > { %1791 = vst [vmem:[%s2523_s7] sm:$0xff] %v2223_v11  ;;  %1793 = vst [vmem:[%s2523_s7 + $0x10] sm:$0xff] %v2223_v11  ;;  %s1829_s16 = sshll.u32 %s2523_s7, 4  ;;  %s2540_s16 = int_to_ptr.vmem [resolvable:$true] %s1829_s16 }
 0x191   : > { %1593 = vrot.lane.b32.xlu0 %v1583_v27, %s2236_s12  ;;  %1087 = vrot.lane.b32.xlu1 %v2388_v8, %s2230_s8  ;;  %p2159_p5 = scmp.lt.s32.totalorder %s2540_s16, %s2157_s15 }
 0x195   : > { %1584 = vrot.lane.b32.xlu0 %v2408_v21, %s2237_s28  ;;  %1085 = vrot.lane.b32.xlu1 %v2384_v7, %s2230_s8  ;;  %s2152_s28 = scalar_lea.vmem %s2540_s16, 384 }
 0x196   : > { %p2153_p6 = scmp.ne.s32.totalorder %s2540_s16, %s2152_s28  ;;  %p2160_p10 = scmp.lt.s32.totalorder %s2158_s23, %s2152_s28 }
 0x198   : > { %p2154_p12 = pnand %p2153_p6, %p2597_p11  ;;  %p2161_p2 = por %p2160_p10, %p2159_p5 }
 0x199   : > { %1255 = vrot.lane.b32.xlu1 %v2388_v8, %s2232_s10  ;;  %1762 = vperm.xlu0 %2118, %v1759_v28  }
 0x19a   : > { %p2155_p13 = pneg %p2154_p12 }
 0x19c   : > { %p2162_p4 = pnand %p2161_p2, %p2155_p13 }
 0x19d   : > { %1253 = vrot.lane.b32.xlu1 %v2384_v7, %s2232_s10  ;;  %s2051_s10 = smul.u32 384, %s2292_s22  ;;  %s1815_s22 = scalar_lea.sflag [#allocation4], %s2370_s13 }
 0x1a1   : > { %1423 = vrot.lane.b32.xlu1 %v2388_v8, %s2234_s17 }
 0x1a5   : > { %1421 = vrot.lane.b32.xlu1 %v2384_v7, %s2234_s17 }
 0x1a9   : > { %1591 = vrot.lane.b32.xlu1 %v2388_v8, %s2236_s12 }
 0x1ad   : > { %1589 = vrot.lane.b32.xlu1 %v2384_v7, %s2236_s12  ;;  %s2538_s12 = scalar_lea.hbm %s2589_s5, %s2051_s10 }
 0x1b1   : > { %1753 = vperm.xlu1 %2117, %v1750_v30  }
 0x1df   : > { %v261_v32 = vpop.permute.xlu1 %260  ;;  %v745_v33 = vpop.permute.xlu0 %744 }
 0x1e0   : > { %1906 = vmatmul.mubr.msk.f32.vlgmr.msra.gmra.mrb[0].mxu0 %vm274_vm4, %v261_v32  ;;  %1973 = vmatmul.mubr.msk.f32.vlgmr.msra.gmra.mrb[0].mxu1 %vm274_vm4, %v261_v32 }
 0x1e1   : > { %1976 = vmatpush3.msk.msra.mxu1 %vm277_vm3, %v2392_v9  ;;  %1977 = vmatprep.mubr.msk.f32.mxu1 %vm2224_vm1, %v2223_v11 }
 0x1e2   : > { %1980 = vmatprep.subr.mxu1 %v2223_v11  ;;  %1910 = vmatpush1.msk.msra.mxu0 %vm277_vm3, %v2384_v7 }
 0x1e3   : > { %v584_v34 = vpop.permute.xlu1 %583  ;;  %497 = vmatprep.mubr.f32.mxu0 %v2223_v11  ;;  %v922_v36 = vpop.permute.xlu0 %921 }
 0x1e7   : > { %v586_v35 = vpop.permute.xlu1 %585  ;;  %v913_v40 = vpop.permute.xlu0 %912 }
 0x1e8   : > { %v589_v37 = vsel %vm587_vm5, %v584_v34, %v586_v35  ;;  %1911 = vmatmul.mubr.msk.f32.vlgmr.msra.gmra.mrb[0].mxu0 %vm274_vm4, %v2408_v21  ;;  %1978 = vmatmul.mubr.msk.f32.vlgmr.msra.gmra.mrb[0].mxu1 %vm274_vm4, %v2408_v21 }
 0x1e9   : > { %1981 = vmatpush3.msk.msra.mxu1 %vm277_vm3, %v586_v35  ;;  %1914 = vmatprep.subr.msk.mxu0 %vm277_vm3, %v589_v37  ;;  %v1780_v35 = vrot.slane %v1771_v17, %v1779_v29 }
 0x1ea   : > { %1982 = vmatprep.mubr.msk.f32.mxu1 %vm2224_vm1, %v2223_v11  ;;  %662 = vmatprep.mubr.f32.mxu0 %v2223_v11 }
 0x1eb   : > { %v582_v38 = vpop.permute.xlu1 %581  ;;  %1985 = vmatprep.subr.mxu1 %v2223_v11  ;;  %v1090_v43 = vpop.permute.xlu0 %1089 }
 0x1ec   : > { %v588_v39 = vsel %vm587_vm5, %v582_v38, %v584_v34 }
 0x1ed   : > { %1915 = vmatpush1.msk.msra.mxu0 %vm277_vm3, %v588_v39 }
 0x1ef   : > { %v577_v41 = vpop.permute.xlu1 %576  ;;  %v1081_v47 = vpop.permute.xlu0 %1080 }
 0x1f0   : > { %1916 = vmatmul.mubr.msk.f32.vlgmr.msra.gmra.mrb[0].mxu0 %vm274_vm4, %v577_v41  ;;  %1983 = vmatmul.mubr.msk.f32.vlgmr.msra.gmra.mrb[0].mxu1 %vm274_vm4, %v577_v41 }
 0x1f1   : > { %1987 = vmatprep.mubr.msk.f32.mxu1 %vm2224_vm1, %v2223_v11  ;;  %1986 = vmatpush3.msk.msra.mxu1 %vm277_vm3, %v754_v31 }
 0x1f2   : > { %830 = vmatprep.mubr.f32.mxu0 %v2223_v11  ;;  %1990 = vmatprep.subr.mxu1 %v2223_v11 }
 0x1f3   : > { %v752_v42 = vpop.permute.xlu1 %751  ;;  %v1258_v51 = vpop.permute.xlu0 %1257 }
 0x1f4   : > { %v757_v44 = vsel %vm755_vm6, %v752_v42, %v754_v31 }
 0x1f5   : > { %1919 = vmatprep.subr.msk.mxu0 %vm277_vm3, %v757_v44 }
 0x1f7   : > { %v750_v45 = vpop.permute.xlu1 %749  ;;  %v1249_v55 = vpop.permute.xlu0 %1248 }
 0x1f8   : > { %v756_v46 = vsel %vm755_vm6, %v750_v45, %v752_v42  ;;  %1988 = vmatmul.mubr.msk.f32.vlgmr.msra.gmra.mrb[0].mxu1 %vm274_vm4, %v745_v33 }
 0x1f9   : > { %1920 = vmatpush1.msk.msra.mxu0 %vm277_vm3, %v756_v46  ;;  %1991 = vmatpush3.msk.msra.mxu1 %vm277_vm3, %v922_v36 }
 0x1fa   : > { %1921 = vmatmul.mubr.msk.f32.vlgmr.msra.gmra.mrb[0].mxu0 %vm274_vm4, %v745_v33  ;;  %1992 = vmatprep.mubr.msk.f32.mxu1 %vm2224_vm1, %v2223_v11 }
 0x1fb   : > { %v920_v48 = vpop.permute.xlu1 %919  ;;  %998 = vmatprep.mubr.f32.mxu0 %v2223_v11  ;;  %1995 = vmatprep.subr.mxu1 %v2223_v11  ;;  %v1426_v59 = vpop.permute.xlu0 %1425 }
 0x1fc   : > { %v925_v49 = vsel %vm923_vm7, %v920_v48, %v922_v36 }
 0x1fd   : > { %1924 = vmatprep.subr.msk.mxu0 %vm277_vm3, %v925_v49 }
 0x1ff   : > { %v918_v50 = vpop.permute.xlu1 %917  ;;  %v1417_v63 = vpop.permute.xlu0 %1416 }
 0x200   : > { %v924_v52 = vsel %vm923_vm7, %v918_v50, %v920_v48  ;;  %1993 = vmatmul.mubr.msk.f32.vlgmr.msra.gmra.mrb[0].mxu1 %vm274_vm4, %v913_v40 }
 0x201   : > { %1925 = vmatpush1.msk.msra.mxu0 %vm277_vm3, %v924_v52  ;;  %1996 = vmatpush3.msk.msra.mxu1 %vm277_vm3, %v1090_v43 }
 0x202   : > { %1926 = vmatmul.mubr.msk.f32.vlgmr.msra.gmra.mrb[0].mxu0 %vm274_vm4, %v913_v40  ;;  %1997 = vmatprep.mubr.msk.f32.mxu1 %vm2224_vm1, %v2223_v11 }
 0x203   : > { %v1088_v53 = vpop.permute.xlu1 %1087  ;;  %1166 = vmatprep.mubr.f32.mxu0 %v2223_v11  ;;  %2000 = vmatprep.subr.mxu1 %v2223_v11  ;;  %v1594_v3 = vpop.permute.xlu0 %1593 }
 0x204   : > { %v1093_v54 = vsel %vm1091_vm8, %v1088_v53, %v1090_v43 }
 0x205   : > { %1929 = vmatprep.subr.msk.mxu0 %vm277_vm3, %v1093_v54 }
 0x207   : > { %v1086_v56 = vpop.permute.xlu1 %1085  ;;  %v1585_v7 = vpop.permute.xlu0 %1584 }
 0x208   : > { %v1092_v57 = vsel %vm1091_vm8, %v1086_v56, %v1088_v53  ;;  %1998 = vmatmul.mubr.msk.f32.vlgmr.msra.gmra.mrb[0].mxu1 %vm274_vm4, %v1081_v47 }
 0x209   : > { %1930 = vmatpush1.msk.msra.mxu0 %vm277_vm3, %v1092_v57  ;;  %2001 = vmatpush3.msk.msra.mxu1 %vm277_vm3, %v1258_v51 }
 0x20a   : > { %1931 = vmatmul.mubr.msk.f32.vlgmr.msra.gmra.mrb[0].mxu0 %vm274_vm4, %v1081_v47  ;;  %2002 = vmatprep.mubr.msk.f32.mxu1 %vm2224_vm1, %v2223_v11 }
 0x20b   : > { %v1256_v58 = vpop.permute.xlu1 %1255  ;;  %1334 = vmatprep.mubr.f32.mxu0 %v2223_v11  ;;  %2005 = vmatprep.subr.mxu1 %v2223_v11 }
 0x20c   : > { %v1261_v60 = vsel %vm1259_vm9, %v1256_v58, %v1258_v51 }
 0x20d   : > { %1934 = vmatprep.subr.msk.mxu0 %vm277_vm3, %v1261_v60 }
 0x20f   : > { %v1254_v61 = vpop.permute.xlu1 %1253 }
 0x210   : > { %v1260_v62 = vsel %vm1259_vm9, %v1254_v61, %v1256_v58  ;;  %2003 = vmatmul.mubr.msk.f32.vlgmr.msra.gmra.mrb[0].mxu1 %vm274_vm4, %v1249_v55 }
 0x211   : > { %1935 = vmatpush1.msk.msra.mxu0 %vm277_vm3, %v1260_v62  ;;  %2006 = vmatpush3.msk.msra.mxu1 %vm277_vm3, %v1426_v59 }
 0x212   : > { %1936 = vmatmul.mubr.msk.f32.vlgmr.msra.gmra.mrb[0].mxu0 %vm274_vm4, %v1249_v55  ;;  %2007 = vmatprep.mubr.msk.f32.mxu1 %vm2224_vm1, %v2223_v11 }
 0x213   : > { %v1424_v0 = vpop.permute.xlu1 %1423  ;;  %1502 = vmatprep.mubr.f32.mxu0 %v2223_v11  ;;  %2010 = vmatprep.subr.mxu1 %v2223_v11 }
 0x214   : > { %v1429_v1 = vsel %vm1427_vm10, %v1424_v0, %v1426_v59 }
 0x215   : > { %1939 = vmatprep.subr.msk.mxu0 %vm277_vm3, %v1429_v1 }
 0x217   : > { %v1422_v2 = vpop.permute.xlu1 %1421 }
 0x218   : > { %v1428_v4 = vsel %vm1427_vm10, %v1422_v2, %v1424_v0  ;;  %2008 = vmatmul.mubr.msk.f32.vlgmr.msra.gmra.mrb[0].mxu1 %vm274_vm4, %v1417_v63  ;;  %v1763_v16 = vpop.permute.xlu0 %1762 }
 0x219   : > { %1940 = vmatpush1.msk.msra.mxu0 %vm277_vm3, %v1428_v4  ;;  %2011 = vmatpush3.msk.msra.mxu1 %vm277_vm3, %v1594_v3 }
 0x21a   : > { %1941 = vmatmul.mubr.msk.f32.vlgmr.msra.gmra.mrb[0].mxu0 %vm274_vm4, %v1417_v63  ;;  %2012 = vmatprep.mubr.msk.f32.mxu1 %vm2224_vm1, %v2223_v11 }
 0x21b   : > { %v1592_v5 = vpop.permute.xlu1 %1591  ;;  %1670 = vmatprep.mubr.f32.mxu0 %v2223_v11  ;;  %v1776_v11 = vrot.slane %v1771_v17, %v1775_v20 }
 0x21c   : > { %v1597_v6 = vsel %vm1595_vm11, %v1592_v5, %v1594_v3 }
 0x21d   : > { %1944 = vmatprep.subr.msk.mxu0 %vm277_vm3, %v1597_v6 }
 0x21f   : > { %v1590_v8 = vpop.permute.xlu1 %1589 }
 0x220   : > { %v1596_v9 = vsel %vm1595_vm11, %v1590_v8, %v1592_v5  ;;  %2013 = vmatmul.mubr.msk.f32.vlgmr.msra.gmra.mrb[0].mxu1 %vm274_vm4, %v1585_v7 }
 0x221   : > { %1945 = vmatpush1.msk.msra.mxu0 %vm277_vm3, %v1596_v9 }
 0x222   : > { %1946 = vmatmul.mubr.msk.f32.vlgmr.msra.gmra.mrb[0].mxu0 %vm274_vm4, %v1585_v7 }
 0x230   : > { %v1754_v13 = vpop.permute.xlu1 %1753 }
 0x2f3   : > { %v1743_v15 = vpop.f32.mrb[0].mxu1 }
 0x2f4   : > { %v1758_v18 = vmul.f32 %v1754_v13, %v1743_v15  ;;  %v2014_v19 = vpop.f32.mrb[1].mxu1 }
 0x2f5   : > { %v1672_v21 = vpop.f32.mrb[0].mxu0 }
 0x2f6   : > { %v1756_v22 = vmul.f32 %v1754_v13, %v1672_v21  ;;  %v1767_v23 = vadd.f32 %v1763_v16, %v1758_v18  ;;  %v1674_v24 = vpop.f32.mrb[1].mxu0 }
 0x2f7   : > { %v1757_v26 = vmul.f32 %v1754_v13, %v1674_v24 }
 0x2f8   : > { %v1765_v27 = vadd.f32 %v1763_v16, %v1756_v22  ;;  %v1770_v28 = vmax.f32 %v1767_v23, 0.0 }
 0x2f9   : > { %v1766_v30 = vadd.f32 %v1763_v16, %v1757_v26 }
 0x2fa   : > { %v1768_v31 = vmax.f32 %v1765_v27, 0.0  ;;  %v1790_v32 = vmul.f32 %v1784_v25, %v1770_v28 }
 0x2fb   : > { %v1769_v33 = vmax.f32 %v1766_v30, 0.0 }
 0x2fc   : > { %1801 = vrot.lane.b32.xlu0 %v1790_v32, %s2239_s9  ;;  %v1788_v34 = vmul.f32 %v1776_v11, %v1768_v31 }
 0x2fd   : > { %v1789_v36 = vmul.f32 %v1780_v35, %v1769_v33 }
 0x2fe   : > { %1797 = vrot.lane.b32.xlu1 %v1788_v34, %s2239_s9 }
 0x302   : > { %1799 = vrot.lane.b32.xlu1 %v1789_v36, %s2239_s9 }
 0x36e   : > { %v1802_v38 = vpop.permute.xlu0 %1801 }
 0x370   : > { %v1798_v37 = vpop.permute.xlu1 %1797 }
 0x371   : > { %1810 = vst.msk [vmem:[%s2523_s7] sm:$0xff] %vm1809_vm12, %v1798_v37 }
 0x374   : > { %v1800_v39 = vpop.permute.xlu1 %1799 }
 0x375   : > { %v1804_v40 = vsel %vm1803_vm13, %v1798_v37, %v1800_v39  ;;  %v1805_v41 = vsel %vm1803_vm13, %v1800_v39, %v1802_v38 }
 0x376   : > { %1811 = vst [vmem:[%s2523_s7 + $0x8] sm:$0xff] %v1804_v40  ;;  %1813 = vst.msk [vmem:[%s2523_s7 + $0x10] sm:$0xff] %vm1812_vm14, %v1805_v41 }
 0x377   : > { %2165 = shalt.err (!%p2162_p4)
}
 0x378   : > { %s2166_s13 = scalar_lea.hbm %s2538_s12, 384  ;;  %s2170_s7 = scalar_lea.hbm %s2589_s5, 768 }
 0x379   : > { %p2167_p7 = scmp.ne.s32.totalorder %s2538_s12, %s2166_s13  ;;  %p2171_p0 = scmp.lt.u32.totalorder %s2538_s12, %s2589_s5 }
 0x37a   : > { %p2172_p1 = scmp.lt.u32.totalorder %s2170_s7, %s2166_s13  ;;  %p2174_p6 = scmp.lt.u32.totalorder %s2166_s13, %s2538_s12 }
 0x37b   : > { %p2168_p8 = pnand %p2167_p7, %p2597_p11 }
 0x37c   : > { %p2173_p3 = por %p2172_p1, %p2171_p0 }
 0x37d   : > { %p2169_p9 = pneg %p2168_p8 }
 0x37e   : > { %p2175_p12 = por %p2174_p6, %p2173_p3 }
 0x380   : > { %p2176_p13 = pnand %p2175_p12, %p2169_p9 }
 0x382   : > { %2179 = shalt.err (!%p2176_p13)
}
 0x383   : > { %2054 = dma.vmem_to_hbm [thread:$0]  (%p2597_p11), %s2540_s16, 384, %s2538_s12, %s1815_s22  }
 0x384 PF: > { %s1841_s9 = sand.u32 1, %s2206_s18   ;;  %p2598_p5 = scmp.ne.s32.totalorder %s2593_s30, 0 }
 0x385   : > { %p2599_p10 = scmp.ge.s32.totalorder %s2218_s21, 2  ;;  %s1842_s10 = scalar_lea.sflag [#allocation4], %s1841_s9 }
 0x387   : > { %p2061_p2 = pnand %p2599_p10, %p2598_p5 }
 0x389   : > { %2201 = dma.done.wait (!%p2061_p2), %s1842_s10, 384  }
 0x38a   : > { %2203 = vsyncadd (!%p2061_p2), %s1842_s10, 4294966912  ;;  %p18_p4 = scmp.ge.s32.totalorder %s2296_s24, 4   ;;  %s2600_s18 = smov %s2210_s19 }
 0x38b   : > { %s2601_s19 = smov %s2214_s20  ;;  %s2602_s20 = smov %s2308_s27 }
 0x38c   : > { %s2603_s21 = smov %s2296_s24  ;;  %20 = sbr.rel (!%p18_p4) target bundleno = 5 (0x5), region = 85 }
 0x393   :  { %1847 = vsyncpa [#allocation3], 1 }
 0x394   :  { %1849 = vsyncpa [#allocation3 + $0x1], 1 }
 0x395   :  { %1850 = vsyncpa [#allocation4], 1 }
 0x396   :  { %1852 = vsyncpa [#allocation4 + $0x1], 1 }

</bundles_post_ra>
